<compile_context>
chip_gen: v5e
topology: v5e:2x2
jax: 0.10.0
libtpu: 0.0.40
codegen_flags: <defaults>
</compile_context>

<pallas_src>
import jax
import jax.numpy as jnp
from jax.experimental import pallas as pl
from jax.experimental.pallas import tpu as pltpu

STATE_DIM = 16
ACTION_DIM = 4
FC1_OUT = 64
HIDDEN = 32
GATES = 4 * HIDDEN          # 128
LANES = 128
SEQ = 8                     # N: rows of `state`, becomes LSTM sequence length

# ---- packed parameter slab layout (all sections 8-row aligned) ----
R_WFC1 = 0                          # (STATE_DIM, LANES)  fc1 weight, zero-padded lanes
R_BFC1 = R_WFC1 + STATE_DIM         # row R_BFC1 holds fc1 bias (zero-padded lanes)
R_WIH = R_BFC1 + 8                  # (LANES, GATES)      w_ih, zero-padded rows 64..127
R_BG = R_WIH + LANES                # row R_BG holds b_ih + b_hh
R_WHH = R_BG + 8                    # (HIDDEN, GATES)     w_hh
R_WHEAD = R_WHH + HIDDEN            # (HIDDEN, LANES)     [w_probs | w_critic | 0...]
R_BHEAD = R_WHEAD + HIDDEN          # row R_BHEAD holds [b_probs | b_critic | 0...]
SLAB_ROWS = R_BHEAD + 8             # 232


def actor_critic_kernel(state_ref, hc0_ref, w_ref, out_ref):
    n_steps = state_ref.shape[0]

    # ---- static slices of the packed parameter slab ----
    w_fc1 = w_ref[R_WFC1:R_WFC1 + STATE_DIM, :]       # (STATE_DIM, LANES)
    b_fc1 = w_ref[R_BFC1:R_BFC1 + 1, :]               # (1, LANES)
    w_ih = w_ref[R_WIH:R_WIH + LANES, :]              # (LANES, GATES)
    b_g = w_ref[R_BG:R_BG + 1, :]                     # (1, GATES)
    w_hh = w_ref[R_WHH:R_WHH + HIDDEN, :]             # (HIDDEN, GATES)
    w_head = w_ref[R_WHEAD:R_WHEAD + HIDDEN, :]       # (HIDDEN, LANES)
    b_head = w_ref[R_BHEAD:R_BHEAD + 1, :]            # (1, LANES)

    # ---- fc1 + ReLU, lane-padded: pad columns are exactly 0 ----
    x = jnp.maximum(
        jnp.dot(state_ref[...], w_fc1, preferred_element_type=jnp.float32)
        + b_fc1,
        0.0,
    )  # (N, LANES); cols >= FC1_OUT are 0

    # ---- hoisted LSTM input projection for all timesteps ----
    # pad rows of w_ih are zero, so this equals x[:, :64] @ W_ih^T + (b_ih+b_hh)
    gates_in = (
        jnp.dot(x, w_ih, preferred_element_type=jnp.float32) + b_g
    )  # (N, GATES), gate order i,f,g,o

    # ---- LSTM recurrence (batch = 1), h/c carried as values ----
    h = hc0_ref[0:1, :]  # (1, HIDDEN)
    c = hc0_ref[1:2, :]  # (1, HIDDEN)

    hs = []
    for t in range(n_steps):  # fully unrolled; all indices static
        gates = gates_in[t:t + 1, :] + jnp.dot(
            h, w_hh, preferred_element_type=jnp.float32
        )  # (1, GATES)
        s_all = jax.nn.sigmoid(gates)   # one EUP pass for i, f, o
        t_all = jnp.tanh(gates)         # one EUP pass for g
        i_g = s_all[:, 0 * HIDDEN:1 * HIDDEN]
        f_g = s_all[:, 1 * HIDDEN:2 * HIDDEN]
        g_g = t_all[:, 2 * HIDDEN:3 * HIDDEN]
        o_g = s_all[:, 3 * HIDDEN:4 * HIDDEN]
        c = f_g * c + i_g * g_g
        h = o_g * jnp.tanh(c)
        hs.append(h)

    hseq = jnp.concatenate(hs, axis=0)  # (N, HIDDEN), stays in vregs (no scratch)

    # ---- fused actor + critic head, lane-dense: (N, H) @ (H, 128) ----
    head = (
        jnp.dot(hseq, w_head, preferred_element_type=jnp.float32) + b_head
    )  # (N, LANES): cols 0..A-1 logits, col A value, cols > A exactly 0

    # masked softmax over the first ACTION_DIM lanes only (pad cols excluded)
    col = jax.lax.broadcasted_iota(jnp.int32, (n_steps, LANES), 1)
    is_logit = col < ACTION_DIM
    m = jnp.max(jnp.where(is_logit, head, -jnp.inf), axis=-1, keepdims=True)
    e = jnp.where(is_logit, jnp.exp(head - m), 0.0)
    probs = e / jnp.sum(e, axis=-1, keepdims=True)  # exact divide (tolerance-safe)

    rows = jnp.where(is_logit, probs, head)  # [probs | value | 0...]

    # ---- single lane-dense output tile: [rows ; h_n ; c_n] ----
    hc2 = jnp.concatenate([h, c], axis=0)                       # (2, HIDDEN)
    hc_full = jnp.concatenate(
        [hc2, jnp.zeros((2, LANES - HIDDEN), jnp.float32)], axis=1)  # (2, LANES)
    out_ref[...] = jnp.concatenate([rows, hc_full], axis=0)     # (N+2, LANES)


def init_params(key, state_dim=STATE_DIM, action_dim=ACTION_DIM):
    """Deterministic PyTorch-style uniform init; weights pre-transposed for x @ W^T."""
    ks = jax.random.split(key, 12)

    def u(k, shape, fan_in):
        bound = 1.0 / jnp.sqrt(fan_in)
        return jax.random.uniform(k, shape, jnp.float32, -bound, bound)

    return {
        "w_fc1_t":    u(ks[0], (state_dim, FC1_OUT), state_dim),
        "b_fc1":      u(ks[1], (1, FC1_OUT), state_dim),
        "w_ih_t":     u(ks[2], (FC1_OUT, GATES), HIDDEN),
        "b_ih":       u(ks[3], (1, GATES), HIDDEN),
        "w_hh_t":     u(ks[4], (HIDDEN, GATES), HIDDEN),
        "b_hh":       u(ks[5], (1, GATES), HIDDEN),
        "w_probs_t":  u(ks[6], (HIDDEN, action_dim), HIDDEN),
        "b_probs":    u(ks[7], (1, action_dim), HIDDEN),
        "w_critic_t": u(ks[8], (HIDDEN, 1), HIDDEN),
        "b_critic":   u(ks[9], (1, 1), HIDDEN),
    }


def pack_params(params):
    """Build the (SLAB_ROWS, 128) parameter slab ONCE (hoisted out of forward)."""
    def pad_lanes(a):
        return jnp.pad(a, ((0, 0), (0, LANES - a.shape[1])))

    def pad_rows(a, rows):
        return jnp.pad(a, ((0, rows - a.shape[0]), (0, 0)))

    w_fc1 = pad_lanes(params["w_fc1_t"])                                   # (16, 128)
    b_fc1 = pad_rows(pad_lanes(params["b_fc1"]), 8)                        # (8, 128)
    w_ih = pad_rows(params["w_ih_t"], LANES)                               # (128, 128)
    b_g = pad_rows(params["b_ih"] + params["b_hh"], 8)                     # (8, 128)
    w_hh = params["w_hh_t"]                                                # (32, 128)
    w_head = pad_lanes(
        jnp.concatenate([params["w_probs_t"], params["w_critic_t"]], 1))   # (32, 128)
    b_head = pad_rows(pad_lanes(
        jnp.concatenate([params["b_probs"], params["b_critic"]], 1)), 8)   # (8, 128)

    slab = jnp.concatenate([w_fc1, b_fc1, w_ih, b_g, w_hh, w_head, b_head], axis=0)
    assert slab.shape == (SLAB_ROWS, LANES)
    return slab


def actor_critic_forward(state, hidden, w_slab):
    """Returns (probs (N,1,A), value (N,1,1), (h_n (1,1,H), c_n (1,1,H)))."""
    h0, c0 = hidden
    n = state.shape[0]
    vmem = pl.BlockSpec(memory_space=pltpu.MemorySpace.VMEM)

    # only per-call data concat (parameters are pre-packed in w_slab)
    hc0 = jnp.concatenate(
        [h0.reshape(1, HIDDEN), c0.reshape(1, HIDDEN)], axis=0)  # (2, H)

    out = pl.pallas_call(
        actor_critic_kernel,
        out_shape=jax.ShapeDtypeStruct((n + 2, LANES), jnp.float32),
        in_specs=[vmem, vmem, vmem],
        out_specs=vmem,
        compiler_params=pltpu.CompilerParams(vmem_limit_bytes=4 * 1024 * 1024),
    )(state, hc0, w_slab)

    probs = out[:n, :ACTION_DIM].reshape(n, 1, ACTION_DIM)
    value = out[:n, ACTION_DIM:ACTION_DIM + 1].reshape(n, 1, 1)
    hn = out[n:n + 1, :HIDDEN].reshape(1, 1, HIDDEN)
    cn = out[n + 1:n + 2, :HIDDEN].reshape(1, 1, HIDDEN)
    return probs, value, (hn, cn)


def _reference_forward(state, hidden, params):
    """Pure-JAX reference mirroring the PyTorch module, for correctness check."""
    h, c = hidden[0].reshape(1, HIDDEN), hidden[1].reshape(1, HIDDEN)
    x = jnp.maximum(state @ params["w_fc1_t"] + params["b_fc1"], 0.0)
    hs = []
    for t in range(x.shape[0]):
        g = (x[t:t + 1] @ params["w_ih_t"] + params["b_ih"]
             + h @ params["w_hh_t"] + params["b_hh"])
        i_g = jax.nn.sigmoid(g[:, 0 * HIDDEN:1 * HIDDEN])
        f_g = jax.nn.sigmoid(g[:, 1 * HIDDEN:2 * HIDDEN])
        g_g = jnp.tanh(g[:, 2 * HIDDEN:3 * HIDDEN])
        o_g = jax.nn.sigmoid(g[:, 3 * HIDDEN:4 * HIDDEN])
        c = f_g * c + i_g * g_g
        h = o_g * jnp.tanh(c)
        hs.append(h)
    hseq = jnp.concatenate(hs, axis=0)
    value = hseq @ params["w_critic_t"] + params["b_critic"]
    probs = jax.nn.softmax(hseq @ params["w_probs_t"] + params["b_probs"], axis=-1)
    return (probs.reshape(-1, 1, ACTION_DIM), value.reshape(-1, 1, 1),
            (h.reshape(1, 1, HIDDEN), c.reshape(1, 1, HIDDEN)))


if __name__ == "__main__":
    key = jax.random.PRNGKey(0)
    k_state, k_h, k_c, k_params = jax.random.split(key, 4)

    state = jax.random.normal(k_state, (SEQ, STATE_DIM), jnp.float32)
    h0 = jax.random.normal(k_h, (1, 1, HIDDEN), jnp.float32) * 0.1
    c0 = jax.random.normal(k_c, (1, 1, HIDDEN), jnp.float32) * 0.1
    params = init_params(k_params)
    w_slab = pack_params(params)          # built once, reused every forward call

    probs, value, (hn, cn) = actor_critic_forward(state, (h0, c0), w_slab)
    jax.block_until_ready((probs, value, hn, cn))

    r_probs, r_value, (r_hn, r_cn) = _reference_forward(state, (h0, c0), params)
    assert probs.shape == (SEQ, 1, ACTION_DIM)
    assert value.shape == (SEQ, 1, 1)
    assert hn.shape == (1, 1, HIDDEN) and cn.shape == (1, 1, HIDDEN)
    assert jnp.allclose(probs, r_probs, atol=1e-4)
    assert jnp.allclose(value, r_value, atol=1e-4)
    assert jnp.allclose(hn, r_hn, atol=1e-4)
    assert jnp.allclose(cn, r_cn, atol=1e-4)

    print("KERNEL_OK")
</pallas_src>

<mosaic_0001>
module attributes {stable_mosaic.version = 11 : i64} {
  func.func @actor_critic_kernel(%arg0: memref<8x16xf32, #tpu.memory_space<vmem>>, %arg1: memref<2x32xf32, #tpu.memory_space<vmem>>, %arg2: memref<232x128xf32, #tpu.memory_space<vmem>>, %arg3: memref<10x128xf32, #tpu.memory_space<vmem>>) attributes {dimension_semantics = [], scalar_prefetch = 0 : i64, scratch_operands = 0 : i64, tpu.core_type = #tpu.core_type<tc>} {
    %c0 = arith.constant 0 : index
    %c0_0 = arith.constant 0 : index
    %0 = vector.load %arg2[%c0, %c0_0] : memref<232x128xf32, #tpu.memory_space<vmem>>, vector<16x128xf32>
    %c16 = arith.constant 16 : index
    %c0_1 = arith.constant 0 : index
    %1 = vector.load %arg2[%c16, %c0_1] : memref<232x128xf32, #tpu.memory_space<vmem>>, vector<1x128xf32>
    %c24 = arith.constant 24 : index
    %c0_2 = arith.constant 0 : index
    %2 = vector.load %arg2[%c24, %c0_2] : memref<232x128xf32, #tpu.memory_space<vmem>>, vector<128x128xf32>
    %c152 = arith.constant 152 : index
    %c0_3 = arith.constant 0 : index
    %3 = vector.load %arg2[%c152, %c0_3] : memref<232x128xf32, #tpu.memory_space<vmem>>, vector<1x128xf32>
    %c160 = arith.constant 160 : index
    %c0_4 = arith.constant 0 : index
    %4 = vector.load %arg2[%c160, %c0_4] : memref<232x128xf32, #tpu.memory_space<vmem>>, vector<32x128xf32>
    %c192 = arith.constant 192 : index
    %c0_5 = arith.constant 0 : index
    %5 = vector.load %arg2[%c192, %c0_5] : memref<232x128xf32, #tpu.memory_space<vmem>>, vector<32x128xf32>
    %c224 = arith.constant 224 : index
    %c0_6 = arith.constant 0 : index
    %6 = vector.load %arg2[%c224, %c0_6] : memref<232x128xf32, #tpu.memory_space<vmem>>, vector<1x128xf32>
    %c0_7 = arith.constant 0 : index
    %c0_8 = arith.constant 0 : index
    %7 = vector.load %arg0[%c0_7, %c0_8] : memref<8x16xf32, #tpu.memory_space<vmem>>, vector<8x16xf32>
    %cst = arith.constant dense<0.000000e+00> : vector<8x128xf32>
    %8 = tpu.matmul %7, %0, %cst {dimension_numbers = #tpu.dot_dimension_numbers<[1], [0], [0], [1], [0, 0, 1, 1], [], []>} : vector<8x16xf32>, vector<16x128xf32>, vector<8x128xf32> -> vector<8x128xf32>
    %9 = vector.broadcast %1 : vector<1x128xf32> to vector<8x128xf32>
    %10 = arith.addf %8, %9 : vector<8x128xf32>
    %cst_9 = arith.constant 0.000000e+00 : f32
    %11 = vector.broadcast %cst_9 : f32 to vector<8x128xf32>
    %12 = arith.maximumf %10, %11 : vector<8x128xf32>
    %cst_10 = arith.constant dense<0.000000e+00> : vector<8x128xf32>
    %13 = tpu.matmul %12, %2, %cst_10 {dimension_numbers = #tpu.dot_dimension_numbers<[1], [0], [0], [1], [0, 0, 1, 1], [], []>} : vector<8x128xf32>, vector<128x128xf32>, vector<8x128xf32> -> vector<8x128xf32>
    %14 = vector.broadcast %3 : vector<1x128xf32> to vector<8x128xf32>
    %15 = arith.addf %13, %14 : vector<8x128xf32>
    %c0_11 = arith.constant 0 : index
    %c0_12 = arith.constant 0 : index
    %16 = vector.load %arg1[%c0_11, %c0_12] : memref<2x32xf32, #tpu.memory_space<vmem>>, vector<1x32xf32>
    %c1 = arith.constant 1 : index
    %c0_13 = arith.constant 0 : index
    %17 = vector.load %arg1[%c1, %c0_13] : memref<2x32xf32, #tpu.memory_space<vmem>>, vector<1x32xf32>
    %18 = vector.extract_strided_slice %15 {offsets = [0, 0], sizes = [1, 128], strides = [1, 1]} : vector<8x128xf32> to vector<1x128xf32>
    %cst_14 = arith.constant dense<0.000000e+00> : vector<1x128xf32>
    %19 = tpu.matmul %16, %4, %cst_14 {dimension_numbers = #tpu.dot_dimension_numbers<[1], [0], [0], [1], [0, 0, 1, 1], [], []>} : vector<1x32xf32>, vector<32x128xf32>, vector<1x128xf32> -> vector<1x128xf32>
    %20 = arith.addf %18, %19 : vector<1x128xf32>
    %21 = arith.negf %20 : vector<1x128xf32>
    %22 = math.exp %21 : vector<1x128xf32>
    %cst_15 = arith.constant 1.000000e+00 : f32
    %23 = vector.broadcast %cst_15 : f32 to vector<1x128xf32>
    %24 = arith.addf %23, %22 : vector<1x128xf32>
    %25 = arith.divf %23, %24 : vector<1x128xf32>
    %26 = math.tanh %20 : vector<1x128xf32>
    %27 = vector.extract_strided_slice %25 {offsets = [0, 0], sizes = [1, 32], strides = [1, 1]} : vector<1x128xf32> to vector<1x32xf32>
    %28 = vector.extract_strided_slice %25 {offsets = [0, 32], sizes = [1, 32], strides = [1, 1]} : vector<1x128xf32> to vector<1x32xf32>
    %29 = vector.extract_strided_slice %26 {offsets = [0, 64], sizes = [1, 32], strides = [1, 1]} : vector<1x128xf32> to vector<1x32xf32>
    %30 = vector.extract_strided_slice %25 {offsets = [0, 96], sizes = [1, 32], strides = [1, 1]} : vector<1x128xf32> to vector<1x32xf32>
    %31 = arith.mulf %28, %17 : vector<1x32xf32>
    %32 = arith.mulf %27, %29 : vector<1x32xf32>
    %33 = arith.addf %31, %32 : vector<1x32xf32>
    %34 = math.tanh %33 : vector<1x32xf32>
    %35 = arith.mulf %30, %34 : vector<1x32xf32>
    %36 = vector.extract_strided_slice %15 {offsets = [1, 0], sizes = [1, 128], strides = [1, 1]} : vector<8x128xf32> to vector<1x128xf32>
    %cst_16 = arith.constant dense<0.000000e+00> : vector<1x128xf32>
    %37 = tpu.matmul %35, %4, %cst_16 {dimension_numbers = #tpu.dot_dimension_numbers<[1], [0], [0], [1], [0, 0, 1, 1], [], []>} : vector<1x32xf32>, vector<32x128xf32>, vector<1x128xf32> -> vector<1x128xf32>
    %38 = arith.addf %36, %37 : vector<1x128xf32>
    %39 = arith.negf %38 : vector<1x128xf32>
    %40 = math.exp %39 : vector<1x128xf32>
    %cst_17 = arith.constant 1.000000e+00 : f32
    %41 = vector.broadcast %cst_17 : f32 to vector<1x128xf32>
    %42 = arith.addf %41, %40 : vector<1x128xf32>
    %43 = arith.divf %41, %42 : vector<1x128xf32>
    %44 = math.tanh %38 : vector<1x128xf32>
    %45 = vector.extract_strided_slice %43 {offsets = [0, 0], sizes = [1, 32], strides = [1, 1]} : vector<1x128xf32> to vector<1x32xf32>
    %46 = vector.extract_strided_slice %43 {offsets = [0, 32], sizes = [1, 32], strides = [1, 1]} : vector<1x128xf32> to vector<1x32xf32>
    %47 = vector.extract_strided_slice %44 {offsets = [0, 64], sizes = [1, 32], strides = [1, 1]} : vector<1x128xf32> to vector<1x32xf32>
    %48 = vector.extract_strided_slice %43 {offsets = [0, 96], sizes = [1, 32], strides = [1, 1]} : vector<1x128xf32> to vector<1x32xf32>
    %49 = arith.mulf %46, %33 : vector<1x32xf32>
    %50 = arith.mulf %45, %47 : vector<1x32xf32>
    %51 = arith.addf %49, %50 : vector<1x32xf32>
    %52 = math.tanh %51 : vector<1x32xf32>
    %53 = arith.mulf %48, %52 : vector<1x32xf32>
    %54 = vector.extract_strided_slice %15 {offsets = [2, 0], sizes = [1, 128], strides = [1, 1]} : vector<8x128xf32> to vector<1x128xf32>
    %cst_18 = arith.constant dense<0.000000e+00> : vector<1x128xf32>
    %55 = tpu.matmul %53, %4, %cst_18 {dimension_numbers = #tpu.dot_dimension_numbers<[1], [0], [0], [1], [0, 0, 1, 1], [], []>} : vector<1x32xf32>, vector<32x128xf32>, vector<1x128xf32> -> vector<1x128xf32>
    %56 = arith.addf %54, %55 : vector<1x128xf32>
    %57 = arith.negf %56 : vector<1x128xf32>
    %58 = math.exp %57 : vector<1x128xf32>
    %cst_19 = arith.constant 1.000000e+00 : f32
    %59 = vector.broadcast %cst_19 : f32 to vector<1x128xf32>
    %60 = arith.addf %59, %58 : vector<1x128xf32>
    %61 = arith.divf %59, %60 : vector<1x128xf32>
    %62 = math.tanh %56 : vector<1x128xf32>
    %63 = vector.extract_strided_slice %61 {offsets = [0, 0], sizes = [1, 32], strides = [1, 1]} : vector<1x128xf32> to vector<1x32xf32>
    %64 = vector.extract_strided_slice %61 {offsets = [0, 32], sizes = [1, 32], strides = [1, 1]} : vector<1x128xf32> to vector<1x32xf32>
    %65 = vector.extract_strided_slice %62 {offsets = [0, 64], sizes = [1, 32], strides = [1, 1]} : vector<1x128xf32> to vector<1x32xf32>
    %66 = vector.extract_strided_slice %61 {offsets = [0, 96], sizes = [1, 32], strides = [1, 1]} : vector<1x128xf32> to vector<1x32xf32>
    %67 = arith.mulf %64, %51 : vector<1x32xf32>
    %68 = arith.mulf %63, %65 : vector<1x32xf32>
    %69 = arith.addf %67, %68 : vector<1x32xf32>
    %70 = math.tanh %69 : vector<1x32xf32>
    %71 = arith.mulf %66, %70 : vector<1x32xf32>
    %72 = vector.extract_strided_slice %15 {offsets = [3, 0], sizes = [1, 128], strides = [1, 1]} : vector<8x128xf32> to vector<1x128xf32>
    %cst_20 = arith.constant dense<0.000000e+00> : vector<1x128xf32>
    %73 = tpu.matmul %71, %4, %cst_20 {dimension_numbers = #tpu.dot_dimension_numbers<[1], [0], [0], [1], [0, 0, 1, 1], [], []>} : vector<1x32xf32>, vector<32x128xf32>, vector<1x128xf32> -> vector<1x128xf32>
    %74 = arith.addf %72, %73 : vector<1x128xf32>
    %75 = arith.negf %74 : vector<1x128xf32>
    %76 = math.exp %75 : vector<1x128xf32>
    %cst_21 = arith.constant 1.000000e+00 : f32
    %77 = vector.broadcast %cst_21 : f32 to vector<1x128xf32>
    %78 = arith.addf %77, %76 : vector<1x128xf32>
    %79 = arith.divf %77, %78 : vector<1x128xf32>
    %80 = math.tanh %74 : vector<1x128xf32>
    %81 = vector.extract_strided_slice %79 {offsets = [0, 0], sizes = [1, 32], strides = [1, 1]} : vector<1x128xf32> to vector<1x32xf32>
    %82 = vector.extract_strided_slice %79 {offsets = [0, 32], sizes = [1, 32], strides = [1, 1]} : vector<1x128xf32> to vector<1x32xf32>
    %83 = vector.extract_strided_slice %80 {offsets = [0, 64], sizes = [1, 32], strides = [1, 1]} : vector<1x128xf32> to vector<1x32xf32>
    %84 = vector.extract_strided_slice %79 {offsets = [0, 96], sizes = [1, 32], strides = [1, 1]} : vector<1x128xf32> to vector<1x32xf32>
    %85 = arith.mulf %82, %69 : vector<1x32xf32>
    %86 = arith.mulf %81, %83 : vector<1x32xf32>
    %87 = arith.addf %85, %86 : vector<1x32xf32>
    %88 = math.tanh %87 : vector<1x32xf32>
    %89 = arith.mulf %84, %88 : vector<1x32xf32>
    %90 = vector.extract_strided_slice %15 {offsets = [4, 0], sizes = [1, 128], strides = [1, 1]} : vector<8x128xf32> to vector<1x128xf32>
    %cst_22 = arith.constant dense<0.000000e+00> : vector<1x128xf32>
    %91 = tpu.matmul %89, %4, %cst_22 {dimension_numbers = #tpu.dot_dimension_numbers<[1], [0], [0], [1], [0, 0, 1, 1], [], []>} : vector<1x32xf32>, vector<32x128xf32>, vector<1x128xf32> -> vector<1x128xf32>
    %92 = arith.addf %90, %91 : vector<1x128xf32>
    %93 = arith.negf %92 : vector<1x128xf32>
    %94 = math.exp %93 : vector<1x128xf32>
    %cst_23 = arith.constant 1.000000e+00 : f32
    %95 = vector.broadcast %cst_23 : f32 to vector<1x128xf32>
    %96 = arith.addf %95, %94 : vector<1x128xf32>
    %97 = arith.divf %95, %96 : vector<1x128xf32>
    %98 = math.tanh %92 : vector<1x128xf32>
    %99 = vector.extract_strided_slice %97 {offsets = [0, 0], sizes = [1, 32], strides = [1, 1]} : vector<1x128xf32> to vector<1x32xf32>
    %100 = vector.extract_strided_slice %97 {offsets = [0, 32], sizes = [1, 32], strides = [1, 1]} : vector<1x128xf32> to vector<1x32xf32>
    %101 = vector.extract_strided_slice %98 {offsets = [0, 64], sizes = [1, 32], strides = [1, 1]} : vector<1x128xf32> to vector<1x32xf32>
    %102 = vector.extract_strided_slice %97 {offsets = [0, 96], sizes = [1, 32], strides = [1, 1]} : vector<1x128xf32> to vector<1x32xf32>
    %103 = arith.mulf %100, %87 : vector<1x32xf32>
    %104 = arith.mulf %99, %101 : vector<1x32xf32>
    %105 = arith.addf %103, %104 : vector<1x32xf32>
    %106 = math.tanh %105 : vector<1x32xf32>
    %107 = arith.mulf %102, %106 : vector<1x32xf32>
    %108 = vector.extract_strided_slice %15 {offsets = [5, 0], sizes = [1, 128], strides = [1, 1]} : vector<8x128xf32> to vector<1x128xf32>
    %cst_24 = arith.constant dense<0.000000e+00> : vector<1x128xf32>
    %109 = tpu.matmul %107, %4, %cst_24 {dimension_numbers = #tpu.dot_dimension_numbers<[1], [0], [0], [1], [0, 0, 1, 1], [], []>} : vector<1x32xf32>, vector<32x128xf32>, vector<1x128xf32> -> vector<1x128xf32>
    %110 = arith.addf %108, %109 : vector<1x128xf32>
    %111 = arith.negf %110 : vector<1x128xf32>
    %112 = math.exp %111 : vector<1x128xf32>
    %cst_25 = arith.constant 1.000000e+00 : f32
    %113 = vector.broadcast %cst_25 : f32 to vector<1x128xf32>
    %114 = arith.addf %113, %112 : vector<1x128xf32>
    %115 = arith.divf %113, %114 : vector<1x128xf32>
    %116 = math.tanh %110 : vector<1x128xf32>
    %117 = vector.extract_strided_slice %115 {offsets = [0, 0], sizes = [1, 32], strides = [1, 1]} : vector<1x128xf32> to vector<1x32xf32>
    %118 = vector.extract_strided_slice %115 {offsets = [0, 32], sizes = [1, 32], strides = [1, 1]} : vector<1x128xf32> to vector<1x32xf32>
    %119 = vector.extract_strided_slice %116 {offsets = [0, 64], sizes = [1, 32], strides = [1, 1]} : vector<1x128xf32> to vector<1x32xf32>
    %120 = vector.extract_strided_slice %115 {offsets = [0, 96], sizes = [1, 32], strides = [1, 1]} : vector<1x128xf32> to vector<1x32xf32>
    %121 = arith.mulf %118, %105 : vector<1x32xf32>
    %122 = arith.mulf %117, %119 : vector<1x32xf32>
    %123 = arith.addf %121, %122 : vector<1x32xf32>
    %124 = math.tanh %123 : vector<1x32xf32>
    %125 = arith.mulf %120, %124 : vector<1x32xf32>
    %126 = vector.extract_strided_slice %15 {offsets = [6, 0], sizes = [1, 128], strides = [1, 1]} : vector<8x128xf32> to vector<1x128xf32>
    %cst_26 = arith.constant dense<0.000000e+00> : vector<1x128xf32>
    %127 = tpu.matmul %125, %4, %cst_26 {dimension_numbers = #tpu.dot_dimension_numbers<[1], [0], [0], [1], [0, 0, 1, 1], [], []>} : vector<1x32xf32>, vector<32x128xf32>, vector<1x128xf32> -> vector<1x128xf32>
    %128 = arith.addf %126, %127 : vector<1x128xf32>
    %129 = arith.negf %128 : vector<1x128xf32>
    %130 = math.exp %129 : vector<1x128xf32>
    %cst_27 = arith.constant 1.000000e+00 : f32
    %131 = vector.broadcast %cst_27 : f32 to vector<1x128xf32>
    %132 = arith.addf %131, %130 : vector<1x128xf32>
    %133 = arith.divf %131, %132 : vector<1x128xf32>
    %134 = math.tanh %128 : vector<1x128xf32>
    %135 = vector.extract_strided_slice %133 {offsets = [0, 0], sizes = [1, 32], strides = [1, 1]} : vector<1x128xf32> to vector<1x32xf32>
    %136 = vector.extract_strided_slice %133 {offsets = [0, 32], sizes = [1, 32], strides = [1, 1]} : vector<1x128xf32> to vector<1x32xf32>
    %137 = vector.extract_strided_slice %134 {offsets = [0, 64], sizes = [1, 32], strides = [1, 1]} : vector<1x128xf32> to vector<1x32xf32>
    %138 = vector.extract_strided_slice %133 {offsets = [0, 96], sizes = [1, 32], strides = [1, 1]} : vector<1x128xf32> to vector<1x32xf32>
    %139 = arith.mulf %136, %123 : vector<1x32xf32>
    %140 = arith.mulf %135, %137 : vector<1x32xf32>
    %141 = arith.addf %139, %140 : vector<1x32xf32>
    %142 = math.tanh %141 : vector<1x32xf32>
    %143 = arith.mulf %138, %142 : vector<1x32xf32>
    %144 = vector.extract_strided_slice %15 {offsets = [7, 0], sizes = [1, 128], strides = [1, 1]} : vector<8x128xf32> to vector<1x128xf32>
    %cst_28 = arith.constant dense<0.000000e+00> : vector<1x128xf32>
    %145 = tpu.matmul %143, %4, %cst_28 {dimension_numbers = #tpu.dot_dimension_numbers<[1], [0], [0], [1], [0, 0, 1, 1], [], []>} : vector<1x32xf32>, vector<32x128xf32>, vector<1x128xf32> -> vector<1x128xf32>
    %146 = arith.addf %144, %145 : vector<1x128xf32>
    %147 = arith.negf %146 : vector<1x128xf32>
    %148 = math.exp %147 : vector<1x128xf32>
    %cst_29 = arith.constant 1.000000e+00 : f32
    %149 = vector.broadcast %cst_29 : f32 to vector<1x128xf32>
    %150 = arith.addf %149, %148 : vector<1x128xf32>
    %151 = arith.divf %149, %150 : vector<1x128xf32>
    %152 = math.tanh %146 : vector<1x128xf32>
    %153 = vector.extract_strided_slice %151 {offsets = [0, 0], sizes = [1, 32], strides = [1, 1]} : vector<1x128xf32> to vector<1x32xf32>
    %154 = vector.extract_strided_slice %151 {offsets = [0, 32], sizes = [1, 32], strides = [1, 1]} : vector<1x128xf32> to vector<1x32xf32>
    %155 = vector.extract_strided_slice %152 {offsets = [0, 64], sizes = [1, 32], strides = [1, 1]} : vector<1x128xf32> to vector<1x32xf32>
    %156 = vector.extract_strided_slice %151 {offsets = [0, 96], sizes = [1, 32], strides = [1, 1]} : vector<1x128xf32> to vector<1x32xf32>
    %157 = arith.mulf %154, %141 : vector<1x32xf32>
    %158 = arith.mulf %153, %155 : vector<1x32xf32>
    %159 = arith.addf %157, %158 : vector<1x32xf32>
    %160 = math.tanh %159 : vector<1x32xf32>
    %161 = arith.mulf %156, %160 : vector<1x32xf32>
    %162 = tpu.concatenate %35, %53, %71, %89, %107, %125, %143, %161 in 0 : vector<1x32xf32>, vector<1x32xf32>, vector<1x32xf32>, vector<1x32xf32>, vector<1x32xf32>, vector<1x32xf32>, vector<1x32xf32>, vector<1x32xf32> -> vector<8x32xf32>
    %cst_30 = arith.constant dense<0.000000e+00> : vector<8x128xf32>
    %163 = tpu.matmul %162, %5, %cst_30 {dimension_numbers = #tpu.dot_dimension_numbers<[1], [0], [0], [1], [0, 0, 1, 1], [], []>} : vector<8x32xf32>, vector<32x128xf32>, vector<8x128xf32> -> vector<8x128xf32>
    %164 = vector.broadcast %6 : vector<1x128xf32> to vector<8x128xf32>
    %165 = arith.addf %163, %164 : vector<8x128xf32>
    %166 = tpu.iota {dimensions = array<i32: 1>} : vector<8x128xi32>
    %c4_i32 = arith.constant 4 : i32
    %167 = vector.broadcast %c4_i32 : i32 to vector<8x128xi32>
    %168 = arith.cmpi slt, %166, %167 : vector<8x128xi32>
    %cst_31 = arith.constant 0xFF800000 : f32
    %169 = vector.broadcast %cst_31 : f32 to vector<8x128xf32>
    %170 = arith.select %168, %165, %169 : vector<8x128xi1>, vector<8x128xf32>
    %cst_32 = arith.constant dense<0xFF800000> : vector<8xf32>
    %171 = vector.multi_reduction <maximumf>, %170, %cst_32 [1] : vector<8x128xf32> to vector<8xf32>
    %172 = vector.shape_cast %171 : vector<8xf32> to vector<8x1xf32>
    %173 = vector.broadcast %172 : vector<8x1xf32> to vector<8x128xf32>
    %174 = arith.subf %165, %173 : vector<8x128xf32>
    %175 = math.exp %174 : vector<8x128xf32>
    %cst_33 = arith.constant 0.000000e+00 : f32
    %176 = vector.broadcast %cst_33 : f32 to vector<8x128xf32>
    %177 = arith.select %168, %175, %176 : vector<8x128xi1>, vector<8x128xf32>
    %cst_34 = arith.constant dense<0.000000e+00> : vector<8xf32>
    %178 = vector.multi_reduction <add>, %177, %cst_34 [1] : vector<8x128xf32> to vector<8xf32>
    %179 = vector.shape_cast %178 : vector<8xf32> to vector<8x1xf32>
    %180 = vector.broadcast %179 : vector<8x1xf32> to vector<8x128xf32>
    %181 = arith.divf %177, %180 : vector<8x128xf32>
    %182 = arith.select %168, %181, %165 : vector<8x128xi1>, vector<8x128xf32>
    %183 = tpu.concatenate %161, %159 in 0 : vector<1x32xf32>, vector<1x32xf32> -> vector<2x32xf32>
    %cst_35 = arith.constant 0.000000e+00 : f32
    %184 = vector.broadcast %cst_35 : f32 to vector<2x96xf32>
    %185 = tpu.concatenate %183, %184 in 1 : vector<2x32xf32>, vector<2x96xf32> -> vector<2x128xf32>
    %186 = tpu.concatenate %182, %185 in 0 : vector<8x128xf32>, vector<2x128xf32> -> vector<10x128xf32>
    %c0_36 = arith.constant 0 : index
    %c0_37 = arith.constant 0 : index
    %187 = vector.load %arg3[%c0_36, %c0_37] : memref<10x128xf32, #tpu.memory_space<vmem>>, vector<10x128xf32>
    tpu.vector_store %arg3[%c0_36, %c0_37], %186 {strides = array<i32>} : memref<10x128xf32, #tpu.memory_space<vmem>>, vector<10x128xf32>,
    return
  }
}

</mosaic_0001>

<bundles_post_ra>
// kernel: tpu_custom_call.1
= control target key start
LH: loop header
LB: loop body
LE: loop exit
PB: predicated region body
PF: predicated region fallthrough
CT: control target
= control target key end

     0   :  { %8 = vsyncpa [#allocation3], 0  ;;  %s1145_s0 = inlined_call_operand.hbm [shape: f32[8,16], index: 0, kind: input, shape index: {}]   ;;  %s1146_s1 = inlined_call_operand.hbm [shape: f32[2,32], index: 1, kind: input, shape index: {}]   ;;  %s1147_s2 = inlined_call_operand.hbm [shape: f32[232,128], index: 2, kind: input, shape index: {}]   ;;  %s1148_s3 = inlined_call_operand.hbm [shape: f32[10,128], index: 3, kind: output, shape index: {}]  }
   0x1   :  { %9 = vsyncpa [#allocation6], 0  ;;  %s27_s14 = sshll.u32 %s1146_s1, 4  ;;  %s28_s14 = int_to_ptr.hbm [resolvable:$true] %s27_s14 }
   0x2   :  { %10 = vsyncpa [#allocation4], 0  ;;  %s995_s15 = smov [#allocation5]   ;;  %s16_s19 = sshll.u32 %s1145_s0, 4  ;;  %s17_s19 = int_to_ptr.hbm [resolvable:$true] %s16_s19 }
   0x3   :  { %s29_s16 = sshll.u32 %s995_s15, 4  ;;  %s996_s20 = smov [#allocation2]   ;;  %s30_s16 = int_to_ptr.vmem [resolvable:$true] %s29_s16 }
   0x4   :  { %32 = dma.hbm_to_vmem [thread:$0]  %s28_s14, 32, %s30_s16, [#allocation6]  }
   0x5   :  { %s18_s21 = sshll.u32 %s996_s20, 4  ;;  %s37_s24 = sshll.u32 %s1147_s2, 4  ;;  %s19_s21 = int_to_ptr.vmem [resolvable:$true] %s18_s21  ;;  %s38_s24 = int_to_ptr.hbm [resolvable:$true] %s37_s24 }
   0x6   :  { %21 = dma.hbm_to_vmem [thread:$0]  %s17_s19, 128, %s19_s21, [#allocation3]  }
   0x7   :  { %s997_s1 = smov [#allocation7]   ;;  %s998_s26 = smov 128  }
   0x8   :  { %s39_s25 = sshll.u32 %s997_s1, 4  ;;  %s999_s27 = smov 8   ;;  %s40_s25 = int_to_ptr.vmem [resolvable:$true] %s39_s25 }
   0x9   :  { %45 = dma.hbm_to_vmem [thread:$0]  %s38_s24, 3712, %s40_s25, [#allocation6], %s998_s26, %s998_s26, %s999_s27  }
   0xa   :  { %989 = dma.done.wait [#allocation3], 128  }
   0xb   :  { %990 = vsyncadd [#allocation3], 4294967168 }
   0xc   :  { %991 = dma.done.wait [#allocation6], 3744  }
   0xd   :  { %992 = vsyncadd [#allocation6], 4294963552  ;;  %v59_v0 = vld [vmem:[#allocation7 + $0x8] sm:$0xff]  ;;  %v58_v1 = vld [vmem:[#allocation7] sm:$0xff]  ;;  %vm89_vm0 = vcmask 130048   ;;  %vm137_vm1 = vcmask 261120  }
   0xe   :  { %107 = vmatpush.msra.mxu0 %v59_v0  ;;  %v87_v2 = vld [vmem:[#allocation2] sm:$0xff]  ;;  %v75_v4 = vld [vmem:[#allocation7 + $0x88] sm:$0xff]  ;;  %v74_v5 = vld [vmem:[#allocation7 + $0x80] sm:$0xff]  ;;  %s1000_s0 = smov 64   ;;  %s1001_s2 = smov 32   ;;  %vm692_vm14 = vcmask 1040384  }
   0xf   :  { %v76_v3 = vld [vmem:[#allocation7 + $0x90] sm:$0xff]  ;;  %v1035_v6 = vld [vmem:[#allocation7 + $0xb8] sm:$0xff]  ;;  %v1041_v9 = vld [vmem:[#allocation7 + $0xa8] sm:$0xff]  ;;  %vm694_vm15 = vcmask 1041408   ;;  %s1002_s28 = smov [#allocation8]   ;;  %s782_s5 = sshll.u32 %s1148_s3, 4  ;;  %s783_s5 = int_to_ptr.hbm [resolvable:$true] %s782_s5 }
  0x10   :  { %115 = vmatpush.msra.mxu1 %v76_v3  ;;  %108 = vmatpush.msra.mxu0 %v58_v1  ;;  %v73_v7 = vld [vmem:[#allocation7 + $0x78] sm:$0xff]  ;;  %v1038_v8 = vld [vmem:[#allocation7 + $0xb0] sm:$0xff]  ;;  %v71_v11 = vld [vmem:[#allocation7 + $0x68] sm:$0xff]  ;;  %s780_s29 = sshll.u32 %s1002_s28, 4  ;;  %s781_s29 = int_to_ptr.vmem [resolvable:$true] %s780_s29 }
  0x11   :  { %796 = vmatmul.msk.f32.vlgmr.msra.gmra.mxu0 %vm89_vm0, %v87_v2  ;;  %153 = vmatpush.msra.mxu2 %v1035_v6  ;;  %v72_v10 = vld [vmem:[#allocation7 + $0x70] sm:$0xff]  ;;  %v70_v12 = vld [vmem:[#allocation7 + $0x60] sm:$0xff]  ;;  %v69_v13 = vld [vmem:[#allocation7 + $0x58] sm:$0xff] }
  0x12   :  { %116 = vmatpush.msra.mxu1 %v75_v4  ;;  %220 = vmatpush.msra.mxu3 %v1035_v6  ;;  %v68_v14 = vld [vmem:[#allocation7 + $0x50] sm:$0xff]  ;;  %v67_v15 = vld [vmem:[#allocation7 + $0x48] sm:$0xff]  ;;  %v66_v16 = vld [vmem:[#allocation7 + $0x40] sm:$0xff] }
  0x13   :  { %290 = vmatpush.msrb.mxu0 %v1035_v6  ;;  %154 = vmatpush.msra.mxu2 %v1038_v8  ;;  %v65_v17 = vld [vmem:[#allocation7 + $0x38] sm:$0xff]  ;;  %v64_v18 = vld [vmem:[#allocation7 + $0x30] sm:$0xff]  ;;  %v63_v19 = vld [vmem:[#allocation7 + $0x28] sm:$0xff] }
  0x14   :  { %117 = vmatpush.msra.mxu1 %v74_v5  ;;  %221 = vmatpush.msra.mxu3 %v1038_v8  ;;  %v1050_v20 = vld [vmem:[#allocation7 + $0xa0] sm:$0xff]  ;;  %v135_v21 = vld [vmem:[#allocation5] sm:$0x1]  ;;  %v822_v24 = vld [vmem:[#allocation7 + $0x10] ss:$0 sm:$0xff] }
  0x15   :  { %291 = vmatpush.msrb.mxu0 %v1038_v8  ;;  %155 = vmatpush.msra.mxu2 %v1041_v9  ;;  %v62_v22 = vld [vmem:[#allocation7 + $0x20] sm:$0xff]  ;;  %v61_v23 = vld [vmem:[#allocation7 + $0x18] sm:$0xff] }
  0x16   :  { %118 = vmatpush.msra.mxu1 %v73_v7  ;;  %222 = vmatpush.msra.mxu3 %v1041_v9  ;;  %v823_v28 = vld [vmem:[#allocation7 + $0x98] ss:$0 sm:$0xff]  ;;  %v136_v34 = vld [vmem:[#allocation5 + $0x1] sm:$0x1] }
  0x17   :  { %292 = vmatpush.msrb.mxu0 %v1041_v9  ;;  %156 = vmatpush.msra.mxu2 %v1050_v20 }
  0x18   :  { %119 = vmatpush.msra.mxu1 %v72_v10  ;;  %797 = vmatmul.msk.f32.vlgmr.msra.gmra.mxu2 %vm137_vm1, %v135_v21 }
  0x19   :  { %223 = vmatpush.msra.mxu3 %v1050_v20  ;;  %293 = vmatpush.msrb.mxu0 %v1050_v20 }
  0x1a   :  { %120 = vmatpush.msra.mxu1 %v71_v11  ;;  %360 = vmatpush.msrb.mxu2 %v1035_v6 }
  0x1b   :  { %430 = vmatpush.msrb.mxu3 %v1035_v6  ;;  %500 = vmatpush.msra.mxu0 %v1035_v6 }
  0x1c   :  { %121 = vmatpush.msra.mxu1 %v70_v12  ;;  %361 = vmatpush.msrb.mxu2 %v1038_v8 }
  0x1d   :  { %431 = vmatpush.msrb.mxu3 %v1038_v8  ;;  %501 = vmatpush.msra.mxu0 %v1038_v8 }
  0x1e   :  { %122 = vmatpush.msra.mxu1 %v69_v13  ;;  %362 = vmatpush.msrb.mxu2 %v1041_v9 }
  0x1f   :  { %432 = vmatpush.msrb.mxu3 %v1041_v9  ;;  %502 = vmatpush.msra.mxu0 %v1041_v9 }
  0x20   :  { %123 = vmatpush.msra.mxu1 %v68_v14  ;;  %363 = vmatpush.msrb.mxu2 %v1050_v20 }
  0x21   :  { %433 = vmatpush.msrb.mxu3 %v1050_v20  ;;  %503 = vmatpush.msra.mxu0 %v1050_v20 }
  0x22   :  { %124 = vmatpush.msra.mxu1 %v67_v15  ;;  %570 = vmatpush.msra.mxu2 %v1035_v6 }
  0x24   :  { %125 = vmatpush.msra.mxu1 %v66_v16  ;;  %571 = vmatpush.msra.mxu2 %v1038_v8 }
  0x26   :  { %126 = vmatpush.msra.mxu1 %v65_v17  ;;  %572 = vmatpush.msra.mxu2 %v1041_v9 }
  0x28   :  { %127 = vmatpush.msra.mxu1 %v64_v18  ;;  %573 = vmatpush.msra.mxu2 %v1050_v20 }
  0x2a   :  { %128 = vmatpush.msra.mxu1 %v63_v19 }
  0x2c   :  { %129 = vmatpush.msra.mxu1 %v62_v22 }
  0x2e   :  { %130 = vmatpush.msra.mxu1 %v61_v23 }
  0x8e   :  { %v110_v25 = vpop.f32.mrf.mxu0 }
  0x8f   :  { %v111_v26 = vadd.f32 %v822_v24, %v110_v25 }
  0x91   :  { %v113_v27 = vmax.f32 %v111_v26, 0.0 }
  0x93   :  { %131 = vmatmul.f32.vlgmr.msra.gmra.mxu1 %v113_v27 }
  0x9b   :  { %v158_v30 = vpop.f32.mrf.mxu2 }
 0x110   :  { %v132_v29 = vpop.f32.mrf.mxu1 }
 0x111   :  { %v1072_v31 = vadd.f32 %v823_v28, %v132_v29 }
 0x113   :  { %v161_v32 = vadd.f32 %v158_v30, %v1072_v31 }
 0x115   :  { %825 = vtanh.f32 %v161_v32  ;;  %v798_v35 = vmul.f32 -1.442695, %v161_v32 }
 0x117   :  { %827 = vpow2.f32 %v798_v35 }
 0x11b   :  { %v826_v33 = vpop.eup %825 }
 0x11c   :  { %188 = vrot.lane.b32.xlu0 %v826_v33, %s1000_s0 }
 0x11d   :  { %v828_v36 = vpop.eup %827 }
 0x11e   :  { %v165_v37 = vadd.f32 1.0, %v828_v36 }
 0x120   :  { %829 = vrcp.f32 %v165_v37  ;;  %v177_v43 = vand.u32 2147483648, %v165_v37  ;;  %vm171_vm3 = vweird.f32 %v165_v37  ;;  %v175_v44 = vand.u32 2147483647, %v165_v37 }
 0x122   :  { %v178_v46 = vor.u32 1.1754944e-38, %v177_v43  ;;  %vm176_vm5 = vcmp.eq.f32.partialorder %v175_v44, 8.507059e+37 }
 0x124   :  { %183 = vrot.lane.b32.xlu0 %v136_v34, %s1001_s2 }
 0x126   :  { %v830_v38 = vpop.eup %829 }
 0x127   :  { %v167_v39 = vmul.f32 %v830_v38, %v165_v37  ;;  %vm172_vm2 = vweird.f32 %v830_v38 }
 0x128   :  { %vm173_vm4 = vmor %vm171_vm3, %vm172_vm2 }
 0x129   :  { %v168_v40 = vsub.f32 1.0, %v167_v39 }
 0x12b   :  { %v169_v41 = vmul.f32 %v830_v38, %v168_v40 }
 0x12d   :  { %v170_v42 = vadd.f32 %v830_v38, %v169_v41 }
 0x12f   :  { %v174_v45 = vsel %vm173_vm4, %v830_v38, %v170_v42 }
 0x130   :  { %v179_v48 = vsel %vm176_vm5, %v178_v46, %v174_v45  ;;  %vm696_vm5 = vcmask 1042432  }
 0x18e   :  { %v189_v47 = vpop.permute.xlu0 %188 }
 0x18f   :  { %v191_v49 = vmul.f32 %v189_v47, %v179_v48 }
 0x191   :  { %193 = vrot.lane.b32.xlu1 %v191_v49, %s1001_s2 }
 0x196   :  { %v184_v50 = vpop.permute.xlu0 %183 }
 0x197   :  { %v186_v51 = vmul.f32 %v184_v50, %v179_v48 }
 0x203   :  { %v194_v52 = vpop.permute.xlu1 %193 }
 0x204   :  { %v196_v53 = vadd.f32 %v194_v52, %v186_v51 }
 0x206   :  { %831 = vtanh.f32 %v196_v53  ;;  %v253_v13 = vrot.slane %v196_v53, 7 }
 0x20c   :  { %v832_v54 = vpop.eup %831 }
 0x20d   :  { %199 = vrot.lane.b32.xlu1 %v832_v54, %s1000_s0 }
 0x27f   :  { %v200_v55 = vpop.permute.xlu1 %199 }
 0x280   :  { %v1079_v56 = vmul.f32 %v200_v55, %v179_v48 }
 0x282   :  { %204 = vrot.lane.b32.xlu2 %v1079_v56, %s1001_s2 }
 0x2dc   :  { %v205_v57 = vpop.permute.xlu2 %204 }
 0x2dd   :  { %799 = vmatmul.msk.f32.vlgmr.msra.gmra.mxu3 %vm137_vm1, %v205_v57 }
 0x2de   :  { %640 = vmatpush.msra.mxu3 %v1035_v6 }
 0x2e0   :  { %641 = vmatpush.msra.mxu3 %v1038_v8 }
 0x2e2   :  { %642 = vmatpush.msra.mxu3 %v1041_v9 }
 0x2e4   :  { %643 = vmatpush.msra.mxu3 %v1050_v20 }
 0x360   :  { %v225_v58 = vpop.f32.mrf.mxu3 }
 0x361   :  { %v229_v59 = vrot.slane %v225_v58, 7 }
 0x363   :  { %v231_v60 = vadd.f32 %v229_v59, %v1072_v31 }
 0x365   :  { %833 = vtanh.f32 %v231_v60  ;;  %v800_v62 = vmul.f32 -1.442695, %v231_v60 }
 0x367   :  { %835 = vpow2.f32 %v800_v62 }
 0x36b   :  { %v834_v61 = vpop.eup %833 }
 0x36c   :  { %257 = vrot.lane.b32.xlu2 %v834_v61, %s1000_s0 }
 0x36d   :  { %v836_v63 = vpop.eup %835 }
 0x36e   :  { %v235_v0 = vadd.f32 1.0, %v836_v63 }
 0x370   :  { %837 = vrcp.f32 %v235_v0  ;;  %v247_v6 = vand.u32 2147483648, %v235_v0  ;;  %vm241_vm7 = vweird.f32 %v235_v0  ;;  %v245_v7 = vand.u32 2147483647, %v235_v0 }
 0x372   :  { %v248_v9 = vor.u32 1.1754944e-38, %v247_v6  ;;  %vm246_vm9 = vcmp.eq.f32.partialorder %v245_v7, 8.507059e+37 }
 0x376   :  { %v838_v1 = vpop.eup %837 }
 0x377   :  { %v237_v2 = vmul.f32 %v838_v1, %v235_v0  ;;  %vm242_vm6 = vweird.f32 %v838_v1 }
 0x378   :  { %vm243_vm8 = vmor %vm241_vm7, %vm242_vm6 }
 0x379   :  { %v238_v3 = vsub.f32 1.0, %v237_v2 }
 0x37b   :  { %v239_v4 = vmul.f32 %v838_v1, %v238_v3 }
 0x37d   :  { %v240_v5 = vadd.f32 %v838_v1, %v239_v4 }
 0x37f   :  { %v244_v8 = vsel %vm243_vm8, %v838_v1, %v240_v5 }
 0x380   :  { %v249_v11 = vsel %vm246_vm9, %v248_v9, %v244_v8 }
 0x381   :  { %v255_v14 = vmul.f32 %v253_v13, %v249_v11 }
 0x3c6   :  { %v258_v10 = vpop.permute.xlu2 %257 }
 0x3c7   :  { %v260_v12 = vmul.f32 %v258_v10, %v249_v11 }
 0x3c9   :  { %262 = vrot.lane.b32.xlu0 %v260_v12, %s1001_s2 }
 0x43b   :  { %v263_v15 = vpop.permute.xlu0 %262 }
 0x43c   :  { %v265_v16 = vadd.f32 %v263_v15, %v255_v14 }
 0x43e   :  { %839 = vtanh.f32 %v265_v16  ;;  %v323_v42 = vrot.slane %v265_v16, 7 }
 0x444   :  { %v840_v17 = vpop.eup %839 }
 0x445   :  { %268 = vrot.lane.b32.xlu1 %v840_v17, %s1000_s0 }
 0x4b7   :  { %v269_v18 = vpop.permute.xlu1 %268 }
 0x4b8   :  { %v271_v19 = vmul.f32 %v269_v18, %v249_v11 }
 0x4ba   :  { %v273_v20 = vrot.slane %v271_v19, 1  ;;  %v693_v49 = vsel %vm692_vm14, %v1079_v56, %v271_v19 }
 0x4bc   :  { %274 = vrot.lane.b32.xlu2 %v273_v20, %s1001_s2 }
 0x516   :  { %v275_v21 = vpop.permute.xlu2 %274 }
 0x517   :  { %801 = vmatmul.msk.f32.vlgmr.msrb.gmra.mxu0 %vm137_vm1, %v275_v21 }
 0x594   :  { %v295_v22 = vpop.f32.mrf.mxu0 }
 0x595   :  { %v299_v23 = vrot.slane %v295_v22, 6 }
 0x597   :  { %v301_v24 = vadd.f32 %v299_v23, %v1072_v31 }
 0x599   :  { %841 = vtanh.f32 %v301_v24  ;;  %v802_v26 = vmul.f32 -1.442695, %v301_v24 }
 0x59b   :  { %843 = vpow2.f32 %v802_v26 }
 0x59f   :  { %v842_v25 = vpop.eup %841 }
 0x5a0   :  { %327 = vrot.lane.b32.xlu0 %v842_v25, %s1000_s0 }
 0x5a1   :  { %v844_v27 = vpop.eup %843 }
 0x5a2   :  { %v305_v28 = vadd.f32 1.0, %v844_v27 }
 0x5a4   :  { %845 = vrcp.f32 %v305_v28  ;;  %v317_v35 = vand.u32 2147483648, %v305_v28  ;;  %vm311_vm11 = vweird.f32 %v305_v28  ;;  %v315_v36 = vand.u32 2147483647, %v305_v28 }
 0x5a6   :  { %v318_v38 = vor.u32 1.1754944e-38, %v317_v35  ;;  %vm316_vm13 = vcmp.eq.f32.partialorder %v315_v36, 8.507059e+37 }
 0x5aa   :  { %v846_v29 = vpop.eup %845 }
 0x5ab   :  { %v307_v30 = vmul.f32 %v846_v29, %v305_v28  ;;  %vm312_vm10 = vweird.f32 %v846_v29 }
 0x5ac   :  { %vm313_vm12 = vmor %vm311_vm11, %vm312_vm10  ;;  %vm698_vm10 = vcmask 1043456  }
 0x5ad   :  { %v308_v32 = vsub.f32 1.0, %v307_v30 }
 0x5af   :  { %v309_v33 = vmul.f32 %v846_v29, %v308_v32 }
 0x5b1   :  { %v310_v34 = vadd.f32 %v846_v29, %v309_v33 }
 0x5b3   :  { %v314_v37 = vsel %vm313_vm12, %v846_v29, %v310_v34 }
 0x5b4   :  { %v319_v40 = vsel %vm316_vm13, %v318_v38, %v314_v37 }
 0x5b5   :  { %v325_v43 = vmul.f32 %v323_v42, %v319_v40 }
 0x612   :  { %v328_v39 = vpop.permute.xlu0 %327 }
 0x613   :  { %v330_v41 = vmul.f32 %v328_v39, %v319_v40 }
 0x615   :  { %332 = vrot.lane.b32.xlu1 %v330_v41, %s1001_s2 }
 0x687   :  { %v333_v44 = vpop.permute.xlu1 %332 }
 0x688   :  { %v335_v45 = vadd.f32 %v333_v44, %v325_v43 }
 0x68a   :  { %847 = vtanh.f32 %v335_v45  ;;  %v393_v8 = vrot.slane %v335_v45, 7 }
 0x690   :  { %v848_v46 = vpop.eup %847 }
 0x691   :  { %338 = vrot.lane.b32.xlu2 %v848_v46, %s1000_s0 }
 0x6eb   :  { %v339_v47 = vpop.permute.xlu2 %338 }
 0x6ec   :  { %v341_v48 = vmul.f32 %v339_v47, %v319_v40 }
 0x6ee   :  { %v343_v50 = vrot.slane %v341_v48, 2  ;;  %v695_v51 = vsel %vm694_vm15, %v693_v49, %v341_v48 }
 0x6f0   :  { %344 = vrot.lane.b32.xlu0 %v343_v50, %s1001_s2 }
 0x762   :  { %v345_v52 = vpop.permute.xlu0 %344 }
 0x763   :  { %803 = vmatmul.msk.f32.vlgmr.msrb.gmra.mxu2 %vm137_vm1, %v345_v52 }
 0x7e6   :  { %v365_v53 = vpop.f32.mrf.mxu2 }
 0x7e7   :  { %v369_v54 = vrot.slane %v365_v53, 5 }
 0x7e9   :  { %v371_v55 = vadd.f32 %v369_v54, %v1072_v31 }
 0x7eb   :  { %849 = vtanh.f32 %v371_v55  ;;  %v804_v58 = vmul.f32 -1.442695, %v371_v55 }
 0x7ed   :  { %851 = vpow2.f32 %v804_v58 }
 0x7f1   :  { %v850_v57 = vpop.eup %849 }
 0x7f2   :  { %397 = vrot.lane.b32.xlu1 %v850_v57, %s1000_s0 }
 0x7f3   :  { %v852_v59 = vpop.eup %851 }
 0x7f4   :  { %v375_v60 = vadd.f32 1.0, %v852_v59 }
 0x7f6   :  { %853 = vrcp.f32 %v375_v60  ;;  %v387_v1 = vand.u32 2147483648, %v375_v60  ;;  %vm381_vm2 = vweird.f32 %v375_v60  ;;  %v385_v2 = vand.u32 2147483647, %v375_v60 }
 0x7f8   :  { %v388_v4 = vor.u32 1.1754944e-38, %v387_v1  ;;  %vm386_vm4 = vcmp.eq.f32.partialorder %v385_v2, 8.507059e+37 }
 0x7fc   :  { %v854_v56 = vpop.eup %853 }
 0x7fd   :  { %v377_v61 = vmul.f32 %v854_v56, %v375_v60  ;;  %vm382_vm0 = vweird.f32 %v854_v56 }
 0x7fe   :  { %vm383_vm3 = vmor %vm381_vm2, %vm382_vm0  ;;  %vm700_vm0 = vcmask 1044480  }
 0x7ff   :  { %v378_v62 = vsub.f32 1.0, %v377_v61 }
 0x801   :  { %v379_v63 = vmul.f32 %v854_v56, %v378_v62 }
 0x803   :  { %v380_v0 = vadd.f32 %v854_v56, %v379_v63 }
 0x805   :  { %v384_v3 = vsel %vm383_vm3, %v854_v56, %v380_v0 }
 0x806   :  { %v389_v6 = vsel %vm386_vm4, %v388_v4, %v384_v3 }
 0x807   :  { %v395_v9 = vmul.f32 %v393_v8, %v389_v6 }
 0x864   :  { %v398_v5 = vpop.permute.xlu1 %397 }
 0x865   :  { %v400_v7 = vmul.f32 %v398_v5, %v389_v6 }
 0x867   :  { %402 = vrot.lane.b32.xlu2 %v400_v7, %s1001_s2 }
 0x8c1   :  { %v403_v10 = vpop.permute.xlu2 %402 }
 0x8c2   :  { %v405_v11 = vadd.f32 %v403_v10, %v395_v9 }
 0x8c4   :  { %855 = vtanh.f32 %v405_v11  ;;  %v463_v38 = vrot.slane %v405_v11, 7 }
 0x8ca   :  { %v856_v12 = vpop.eup %855 }
 0x8cb   :  { %408 = vrot.lane.b32.xlu0 %v856_v12, %s1000_s0 }
 0x93d   :  { %v409_v13 = vpop.permute.xlu0 %408 }
 0x93e   :  { %v411_v14 = vmul.f32 %v409_v13, %v389_v6 }
 0x940   :  { %v413_v15 = vrot.slane %v411_v14, 3  ;;  %v697_v16 = vsel %vm696_vm5, %v695_v51, %v411_v14 }
 0x942   :  { %414 = vrot.lane.b32.xlu1 %v413_v15, %s1001_s2 }
 0x9b4   :  { %v415_v17 = vpop.permute.xlu1 %414 }
 0x9b5   :  { %805 = vmatmul.msk.f32.vlgmr.msrb.gmra.mxu3 %vm137_vm1, %v415_v17 }
 0xa38   :  { %v435_v18 = vpop.f32.mrf.mxu3 }
 0xa39   :  { %v439_v19 = vrot.slane %v435_v18, 4 }
 0xa3b   :  { %v441_v20 = vadd.f32 %v439_v19, %v1072_v31 }
 0xa3d   :  { %857 = vtanh.f32 %v441_v20  ;;  %v806_v22 = vmul.f32 -1.442695, %v441_v20 }
 0xa3f   :  { %859 = vpow2.f32 %v806_v22 }
 0xa43   :  { %v858_v21 = vpop.eup %857 }
 0xa44   :  { %467 = vrot.lane.b32.xlu2 %v858_v21, %s1000_s0 }
 0xa45   :  { %v860_v23 = vpop.eup %859 }
 0xa46   :  { %v445_v24 = vadd.f32 1.0, %v860_v23 }
 0xa48   :  { %861 = vrcp.f32 %v445_v24  ;;  %v457_v30 = vand.u32 2147483648, %v445_v24  ;;  %vm451_vm7 = vweird.f32 %v445_v24  ;;  %v455_v32 = vand.u32 2147483647, %v445_v24 }
 0xa4a   :  { %v458_v34 = vor.u32 1.1754944e-38, %v457_v30  ;;  %vm456_vm9 = vcmp.eq.f32.partialorder %v455_v32, 8.507059e+37 }
 0xa4e   :  { %v862_v25 = vpop.eup %861 }
 0xa4f   :  { %v447_v26 = vmul.f32 %v862_v25, %v445_v24  ;;  %vm452_vm6 = vweird.f32 %v862_v25 }
 0xa50   :  { %vm453_vm8 = vmor %vm451_vm7, %vm452_vm6  ;;  %vm702_vm6 = vcmask 1045504  }
 0xa51   :  { %v448_v27 = vsub.f32 1.0, %v447_v26 }
 0xa53   :  { %v449_v28 = vmul.f32 %v862_v25, %v448_v27 }
 0xa55   :  { %v450_v29 = vadd.f32 %v862_v25, %v449_v28 }
 0xa57   :  { %v454_v33 = vsel %vm453_vm8, %v862_v25, %v450_v29 }
 0xa58   :  { %v459_v36 = vsel %vm456_vm9, %v458_v34, %v454_v33 }
 0xa59   :  { %v465_v39 = vmul.f32 %v463_v38, %v459_v36 }
 0xa9e   :  { %v468_v35 = vpop.permute.xlu2 %467 }
 0xa9f   :  { %v470_v37 = vmul.f32 %v468_v35, %v459_v36 }
 0xaa1   :  { %472 = vrot.lane.b32.xlu0 %v470_v37, %s1001_s2 }
 0xb13   :  { %v473_v40 = vpop.permute.xlu0 %472 }
 0xb14   :  { %v475_v41 = vadd.f32 %v473_v40, %v465_v39 }
 0xb16   :  { %863 = vtanh.f32 %v475_v41  ;;  %v533_v3 = vrot.slane %v475_v41, 7 }
 0xb1c   :  { %v864_v42 = vpop.eup %863 }
 0xb1d   :  { %478 = vrot.lane.b32.xlu1 %v864_v42, %s1000_s0 }
 0xb8f   :  { %v479_v43 = vpop.permute.xlu1 %478 }
 0xb90   :  { %v481_v44 = vmul.f32 %v479_v43, %v459_v36 }
 0xb92   :  { %v483_v45 = vrot.slane %v481_v44, 4  ;;  %v699_v46 = vsel %vm698_vm10, %v697_v16, %v481_v44 }
 0xb94   :  { %484 = vrot.lane.b32.xlu2 %v483_v45, %s1001_s2 }
 0xbee   :  { %v485_v47 = vpop.permute.xlu2 %484 }
 0xbef   :  { %807 = vmatmul.msk.f32.vlgmr.msra.gmra.mxu0 %vm137_vm1, %v485_v47 }
 0xc6c   :  { %v505_v48 = vpop.f32.mrf.mxu0 }
 0xc6d   :  { %v509_v49 = vrot.slane %v505_v48, 3 }
 0xc6f   :  { %v511_v50 = vadd.f32 %v509_v49, %v1072_v31 }
 0xc71   :  { %865 = vtanh.f32 %v511_v50  ;;  %v808_v52 = vmul.f32 -1.442695, %v511_v50 }
 0xc73   :  { %867 = vpow2.f32 %v808_v52 }
 0xc77   :  { %v866_v51 = vpop.eup %865 }
 0xc78   :  { %537 = vrot.lane.b32.xlu0 %v866_v51, %s1000_s0 }
 0xc79   :  { %v868_v53 = vpop.eup %867 }
 0xc7a   :  { %v515_v54 = vadd.f32 1.0, %v868_v53 }
 0xc7c   :  { %869 = vrcp.f32 %v515_v54  ;;  %v527_v56 = vand.u32 2147483648, %v515_v54  ;;  %vm521_vm12 = vweird.f32 %v515_v54  ;;  %v525_v61 = vand.u32 2147483647, %v515_v54 }
 0xc7e   :  { %v528_v63 = vor.u32 1.1754944e-38, %v527_v56  ;;  %vm526_vm15 = vcmp.eq.f32.partialorder %v525_v61, 8.507059e+37 }
 0xc82   :  { %v870_v55 = vpop.eup %869 }
 0xc83   :  { %v517_v57 = vmul.f32 %v870_v55, %v515_v54  ;;  %vm522_vm11 = vweird.f32 %v870_v55 }
 0xc84   :  { %vm523_vm13 = vmor %vm521_vm12, %vm522_vm11  ;;  %vm704_vm11 = vcmask 1046528  }
 0xc85   :  { %v518_v58 = vsub.f32 1.0, %v517_v57 }
 0xc87   :  { %v519_v59 = vmul.f32 %v870_v55, %v518_v58 }
 0xc89   :  { %v520_v60 = vadd.f32 %v870_v55, %v519_v59 }
 0xc8b   :  { %v524_v62 = vsel %vm523_vm13, %v870_v55, %v520_v60 }
 0xc8c   :  { %v529_v1 = vsel %vm526_vm15, %v528_v63, %v524_v62 }
 0xc8d   :  { %v535_v4 = vmul.f32 %v533_v3, %v529_v1  ;;  %v85_v3 = vld [vmem:[#allocation7 + $0xd8] sm:$0xff] }
 0xc8e   :  { %724 = vmatpush.msrb.mxu0 %v85_v3 }
 0xcea   :  { %v538_v0 = vpop.permute.xlu0 %537 }
 0xceb   :  { %v540_v2 = vmul.f32 %v538_v0, %v529_v1 }
 0xced   :  { %542 = vrot.lane.b32.xlu1 %v540_v2, %s1001_s2 }
 0xd5f   :  { %v543_v5 = vpop.permute.xlu1 %542 }
 0xd60   :  { %v545_v6 = vadd.f32 %v543_v5, %v535_v4  ;;  %v84_v4 = vld [vmem:[#allocation7 + $0xd0] sm:$0xff]  ;;  %v83_v5 = vld [vmem:[#allocation7 + $0xc8] sm:$0xff] }
 0xd61   :  { %725 = vmatpush.msrb.mxu0 %v84_v4 }
 0xd62   :  { %871 = vtanh.f32 %v545_v6  ;;  %v603_v33 = vrot.slane %v545_v6, 7  ;;  %v82_v6 = vld [vmem:[#allocation7 + $0xc0] sm:$0xff] }
 0xd63   :  { %726 = vmatpush.msrb.mxu0 %v83_v5 }
 0xd65   :  { %727 = vmatpush.msrb.mxu0 %v82_v6 }
 0xd68   :  { %v872_v7 = vpop.eup %871 }
 0xd69   :  { %548 = vrot.lane.b32.xlu2 %v872_v7, %s1000_s0 }
 0xdc3   :  { %v549_v8 = vpop.permute.xlu2 %548 }
 0xdc4   :  { %v551_v9 = vmul.f32 %v549_v8, %v529_v1 }
 0xdc6   :  { %v553_v10 = vrot.slane %v551_v9, 5  ;;  %v701_v11 = vsel %vm700_vm0, %v699_v46, %v551_v9 }
 0xdc8   :  { %554 = vrot.lane.b32.xlu0 %v553_v10, %s1001_s2 }
 0xe3a   :  { %v555_v12 = vpop.permute.xlu0 %554 }
 0xe3b   :  { %809 = vmatmul.msk.f32.vlgmr.msra.gmra.mxu2 %vm137_vm1, %v555_v12 }
 0xebe   :  { %v575_v13 = vpop.f32.mrf.mxu2 }
 0xebf   :  { %v579_v14 = vrot.slane %v575_v13, 2 }
 0xec1   :  { %v581_v15 = vadd.f32 %v579_v14, %v1072_v31 }
 0xec3   :  { %873 = vtanh.f32 %v581_v15  ;;  %v810_v17 = vmul.f32 -1.442695, %v581_v15 }
 0xec5   :  { %875 = vpow2.f32 %v810_v17 }
 0xec9   :  { %v874_v16 = vpop.eup %873 }
 0xeca   :  { %607 = vrot.lane.b32.xlu1 %v874_v16, %s1000_s0  ;;  %v732_v16 = vlaneseq }
 0xecb   :  { %v876_v18 = vpop.eup %875 }
 0xecc   :  { %v585_v19 = vadd.f32 1.0, %v876_v18  ;;  %v733_v17 = vand.u32 127, %v732_v16  ;;  %v824_v18 = vld [vmem:[#allocation7 + $0xe0] ss:$0 sm:$0xff] }
 0xece   :  { %877 = vrcp.f32 %v585_v19  ;;  %v597_v25 = vand.u32 2147483648, %v585_v19  ;;  %vm591_vm3 = vweird.f32 %v585_v19  ;;  %v595_v26 = vand.u32 2147483647, %v585_v19 }
 0xecf   :  { %vm734_vm12 = vcmp.lt.s32.totalorder %v733_v17, 4 }
 0xed0   :  { %v598_v28 = vor.u32 1.1754944e-38, %v597_v25  ;;  %vm596_vm5 = vcmp.eq.f32.partialorder %v595_v26, 8.507059e+37 }
 0xed4   :  { %v878_v20 = vpop.eup %877 }
 0xed5   :  { %v587_v21 = vmul.f32 %v878_v20, %v585_v19  ;;  %vm592_vm2 = vweird.f32 %v878_v20 }
 0xed6   :  { %vm593_vm4 = vmor %vm591_vm3, %vm592_vm2 }
 0xed7   :  { %v588_v22 = vsub.f32 1.0, %v587_v21 }
 0xed9   :  { %v589_v23 = vmul.f32 %v878_v20, %v588_v22 }
 0xedb   :  { %v590_v24 = vadd.f32 %v878_v20, %v589_v23 }
 0xedd   :  { %v594_v27 = vsel %vm593_vm4, %v878_v20, %v590_v24 }
 0xede   :  { %v599_v30 = vsel %vm596_vm5, %v598_v28, %v594_v27 }
 0xedf   :  { %v605_v34 = vmul.f32 %v603_v33, %v599_v30 }
 0xf3c   :  { %v608_v29 = vpop.permute.xlu1 %607 }
 0xf3d   :  { %v610_v32 = vmul.f32 %v608_v29, %v599_v30 }
 0xf3f   :  { %612 = vrot.lane.b32.xlu2 %v610_v32, %s1001_s2 }
 0xf99   :  { %v613_v35 = vpop.permute.xlu2 %612 }
 0xf9a   :  { %v615_v36 = vadd.f32 %v613_v35, %v605_v34 }
 0xf9c   :  { %879 = vtanh.f32 %v615_v36  ;;  %v673_v61 = vrot.slane %v615_v36, 7 }
 0xfa2   :  { %v880_v37 = vpop.eup %879 }
 0xfa3   :  { %618 = vrot.lane.b32.xlu0 %v880_v37, %s1000_s0 }
0x1015   :  { %v619_v38 = vpop.permute.xlu0 %618 }
0x1016   :  { %v621_v39 = vmul.f32 %v619_v38, %v599_v30 }
0x1018   :  { %v623_v40 = vrot.slane %v621_v39, 6  ;;  %v703_v41 = vsel %vm702_vm6, %v701_v11, %v621_v39 }
0x101a   :  { %624 = vrot.lane.b32.xlu1 %v623_v40, %s1001_s2 }
0x108c   :  { %v625_v42 = vpop.permute.xlu1 %624 }
0x108d   :  { %811 = vmatmul.msk.f32.vlgmr.msra.gmra.mxu3 %vm137_vm1, %v625_v42 }
0x1110   :  { %v645_v43 = vpop.f32.mrf.mxu3 }
0x1111   :  { %v649_v44 = vrot.slane %v645_v43, 1 }
0x1113   :  { %v651_v45 = vadd.f32 %v649_v44, %v1072_v31 }
0x1115   :  { %881 = vtanh.f32 %v651_v45  ;;  %v812_v47 = vmul.f32 -1.442695, %v651_v45 }
0x1117   :  { %883 = vpow2.f32 %v812_v47 }
0x111b   :  { %v882_v46 = vpop.eup %881 }
0x111c   :  { %677 = vrot.lane.b32.xlu2 %v882_v46, %s1000_s0 }
0x111d   :  { %v884_v48 = vpop.eup %883 }
0x111e   :  { %v655_v49 = vadd.f32 1.0, %v884_v48 }
0x1120   :  { %885 = vrcp.f32 %v655_v49  ;;  %v667_v55 = vand.u32 2147483648, %v655_v49  ;;  %vm661_vm8 = vweird.f32 %v655_v49  ;;  %v665_v57 = vand.u32 2147483647, %v655_v49 }
0x1122   :  { %v668_v58 = vor.u32 1.1754944e-38, %v667_v55  ;;  %vm666_vm10 = vcmp.eq.f32.partialorder %v665_v57, 8.507059e+37 }
0x1126   :  { %v886_v50 = vpop.eup %885 }
0x1127   :  { %v657_v51 = vmul.f32 %v886_v50, %v655_v49  ;;  %vm662_vm7 = vweird.f32 %v886_v50 }
0x1128   :  { %vm663_vm9 = vmor %vm661_vm8, %vm662_vm7 }
0x1129   :  { %v658_v52 = vsub.f32 1.0, %v657_v51 }
0x112b   :  { %v659_v53 = vmul.f32 %v886_v50, %v658_v52 }
0x112d   :  { %v660_v54 = vadd.f32 %v886_v50, %v659_v53 }
0x112f   :  { %v664_v31 = vsel %vm663_vm9, %v886_v50, %v660_v54 }
0x1130   :  { %v669_v60 = vsel %vm666_vm10, %v668_v58, %v664_v31 }
0x1131   :  { %v675_v62 = vmul.f32 %v673_v61, %v669_v60 }
0x1176   :  { %v678_v59 = vpop.permute.xlu2 %677 }
0x1177   :  { %v680_v56 = vmul.f32 %v678_v59, %v669_v60 }
0x1179   :  { %682 = vrot.lane.b32.xlu0 %v680_v56, %s1001_s2 }
0x11eb   :  { %v683_v63 = vpop.permute.xlu0 %682 }
0x11ec   :  { %v685_v0 = vadd.f32 %v683_v63, %v675_v62 }
0x11ee   :  { %887 = vtanh.f32 %v685_v0  ;;  %v764_v2 = vrot.slane %v685_v0, 6 }
0x11f4   :  { %v888_v1 = vpop.eup %887 }
0x11f5   :  { %688 = vrot.lane.b32.xlu1 %v888_v1, %s1000_s0 }
0x11fd   :  { %765 = vrot.lane.b32.xlu1 %v764_v2, %s1000_s0 }
0x1267   :  { %v689_v7 = vpop.permute.xlu1 %688 }
0x1268   :  { %v691_v8 = vmul.f32 %v689_v7, %v669_v60 }
0x126a   :  { %v705_v9 = vsel %vm704_vm11, %v703_v41, %v691_v8  ;;  %v761_v10 = vrot.slane %v691_v8, 7 }
0x126b   :  { %708 = vrot.lane.b32.xlu2 %v705_v9, %s1001_s2 }
0x126f   :  { %v766_v11 = vpop.permute.xlu1 %765 }
0x1270   :  { %v768_v12 = vsel %vm692_vm14, %v761_v10, %v766_v11 }
0x1271   :  { %770 = vrot.lane.b32.xlu1 %v768_v12, %s1001_s2 }
0x12c5   :  { %v709_v13 = vpop.permute.xlu2 %708 }
0x12c6   :  { %813 = vmatmul.msk.f32.vlgmr.msrb.gmra.mxu0 %vm137_vm1, %v709_v13 }
0x12e3   :  { %v771_v14 = vpop.permute.xlu1 %770 }
0x12e4   :  { %v773_v15 = vsel %vm137_vm1, %v771_v14, 0.0 }
0x12e5   :  { %775 = vst [vmem:[#allocation8 + $0x8] sm:$0x3] %v773_v15 }
0x1343   :  { %v729_v19 = vpop.f32.mrf.mxu0 }
0x1344   :  { %v730_v20 = vadd.f32 %v824_v18, %v729_v19 }
0x1346   :  { %v735_v21 = vsel %vm734_vm12, %v730_v20, -inf }
0x1347   :  { %736 = vmax.xlane.f32.xlu0 %v735_v21 }
0x13ba   :  { %v737_v22 = vpop.xlane.xlu0 %736 }
0x13bb   :  { %v738_v23 = vsub.f32 %v730_v20, %v737_v22 }
0x13bd   :  { %v739_v24 = vmul.f32 1.442695, %v738_v23 }
0x13bf   :  { %889 = vpow2.f32 %v739_v24 }
0x13c5   :  { %v890_v25 = vpop.eup %889 }
0x13c6   :  { %v741_v26 = vsel %vm734_vm12, %v890_v25, 0.0 }
0x13c7   :  { %742 = vadd.xlane.f32.xlu2 %v741_v26 }
0x143a   :  { %v743_v27 = vpop.xlane.xlu2 %742 }
0x143b   :  { %891 = vrcp.f32 %v743_v27  ;;  %v755_v32 = vand.u32 2147483648, %v743_v27  ;;  %v753_v34 = vand.u32 2147483647, %v743_v27  ;;  %vm749_vm14 = vweird.f32 %v743_v27 }
0x143d   :  { %v756_v36 = vor.u32 1.1754944e-38, %v755_v32  ;;  %vm754_vm15 = vcmp.eq.f32.partialorder %v753_v34, 8.507059e+37 }
0x1441   :  { %v892_v28 = vpop.eup %891 }
0x1442   :  { %v745_v29 = vmul.f32 %v892_v28, %v743_v27  ;;  %vm750_vm1 = vweird.f32 %v892_v28 }
0x1443   :  { %vm751_vm13 = vmor %vm749_vm14, %vm750_vm1 }
0x1444   :  { %v746_v30 = vsub.f32 1.0, %v745_v29 }
0x1446   :  { %v747_v33 = vmul.f32 %v892_v28, %v746_v30 }
0x1448   :  { %v748_v35 = vadd.f32 %v892_v28, %v747_v33 }
0x144a   :  { %v752_v37 = vsel %vm751_vm13, %v892_v28, %v748_v35 }
0x144b   :  { %v757_v38 = vsel %vm754_vm15, %v756_v36, %v752_v37 }
0x144c   :  { %v758_v39 = vmul.f32 %v757_v38, %v741_v26 }
0x144e   :  { %v759_v40 = vsel %vm734_vm12, %v758_v39, %v730_v20 }
0x144f   :  { %774 = vst [vmem:[#allocation8] sm:$0xff] %v759_v40 }
0x1450   :  { %788 = dma.vmem_to_hbm [thread:$0]  %s781_s29, 256, %s783_s5, [#allocation4], %s998_s26, %s998_s26, %s999_s27  }
0x1451   :  { %993 = dma.done.wait [#allocation4], 256  }
0x1452   :  { %994 = vsyncadd [#allocation4], 4294967040 }
0x1453   :  { %793 = vsyncpa [#allocation3], 1 }
0x1454   :  { %794 = vsyncpa [#allocation6], 1 }
0x1455   :  { %795 = vsyncpa [#allocation4], 1 }

</bundles_post_ra>
